<compile_context>
chip_gen: v7x
topology: tpu7x:2x2x1
jax: 0.10.0
libtpu: 0.0.40
codegen_flags: <defaults>
</compile_context>

<pallas_src>
import jax
import jax.numpy as jnp
from jax.experimental import pallas as pl
from jax.experimental.pallas import tpu as pltpu

_LANE = 128
_SUBLANE = 8
_TARGET_BLOCK_BYTES = 2 * 1024 * 1024  # per-block target; 6 double-buffered blocks ~= 12 MiB


def _add_prompt_kernel(p_ref, x_ref, o_ref):
    # p_ref / x_ref / o_ref: (tb, tf). Single unconditional full-block store.
    o_ref[...] = x_ref[...] + p_ref[...]


def _round_up(a: int, m: int) -> int:
    return -(-a // m) * m


def _largest_lane_divisor(F: int, cap: int) -> int:
    """Largest multiple of _LANE that divides F and is <= cap, or 0 if none."""
    if F % _LANE != 0 or cap < _LANE:
        return 0
    n = F // _LANE
    cap_units = cap // _LANE
    best = 0
    d = 1
    while d * d <= n:
        if n % d == 0:
            for c in (d, n // d):
                if c <= cap_units and c > best:
                    best = c
        d += 1
    return best * _LANE


def stripe_pad_prompter(x: jax.Array, pad_down: jax.Array) -> jax.Array:
    """x: (B, C, H, W); pad_down: (1, C, P, W). Returns x + zero-padded prompt."""
    B, C, H, W = x.shape
    _, Cp, P, Wp = pad_down.shape
    assert Cp == C and Wp == W and 0 <= P <= H

    F = C * H * W
    itemsize = jnp.dtype(x.dtype).itemsize

    # One-time full-height prompt (rows >= P are zero), flattened lane-dense.
    prompt = jnp.concatenate(
        [pad_down.astype(x.dtype), jnp.zeros((1, C, H - P, W), dtype=x.dtype)],
        axis=2,
    ).reshape(1, F)

    # ---- Row (batch) tile first ------------------------------------------
    if B <= _SUBLANE:
        tb = B                      # block dim == full array dim -> legal layout
        Bp = B
    elif B % _SUBLANE == 0:
        tb = _SUBLANE
        Bp = B
    else:
        tb = _SUBLANE               # rare ragged-batch fallback: pad a few rows
        Bp = _round_up(B, _SUBLANE)
    nb = Bp // tb

    # ---- Column (lane) tile second, within the per-block VMEM budget ------
    f_lane = _round_up(F, _LANE)
    tf_budget = max(_LANE, (_TARGET_BLOCK_BYTES // (tb * itemsize) // _LANE) * _LANE)

    # v7x megacore: guarantee >=2 grid steps along a parallel axis if possible.
    tf_cap = tf_budget
    if nb < 2 and f_lane >= 2 * _LANE:
        tf_cap = min(tf_cap, (f_lane // 2 // _LANE) * _LANE)

    tf = _largest_lane_divisor(F, tf_cap)
    if tf > 0:
        Fp = F                      # common path: no feature padding needed
    else:
        tf = min(f_lane, tf_cap)    # fallback: F not a multiple of 128
        Fp = _round_up(F, tf)
    nf = Fp // tf

    # ---- Wrapper-side layout (pads only on the rare ragged fallback) ------
    x2 = x.reshape(B, F)
    p2 = prompt
    if Bp != B or Fp != F:
        x2 = jnp.pad(x2, ((0, Bp - B), (0, Fp - F)))
    if Fp != F:
        p2 = jnp.pad(p2, ((0, 0), (0, Fp - F)))
    # Pre-replicate the prompt to tb rows (tiny) -> full-vreg VPU add in-kernel.
    p2 = jnp.broadcast_to(p2, (tb, Fp))

    grid = (nf, nb)  # batch-block axis innermost -> prompt block stays resident

    out = pl.pallas_call(
        _add_prompt_kernel,
        out_shape=jax.ShapeDtypeStruct((Bp, Fp), x.dtype),
        grid_spec=pl.GridSpec(
            grid=grid,
            in_specs=[
                pl.BlockSpec((tb, tf), lambda jf, ib: (0, jf)),   # prompt (resident over ib)
                pl.BlockSpec((tb, tf), lambda jf, ib: (ib, jf)),  # x
            ],
            out_specs=pl.BlockSpec((tb, tf), lambda jf, ib: (ib, jf)),
        ),
        compiler_params=pltpu.CompilerParams(
            dimension_semantics=("parallel", "parallel"),
        ),
        cost_estimate=pl.CostEstimate(
            flops=Bp * Fp,
            transcendentals=0,
            # x read + out write + prompt (one pass per feature block).
            bytes_accessed=(2 * Bp * Fp + tb * Fp) * itemsize,
        ),
    )(p2, x2)

    if Bp != B or Fp != F:
        out = out[:B, :F]
    return out.reshape(B, C, H, W)


if __name__ == "__main__":
    # args.image_size = 16, args.prompt_size = 4  -> base_size = 12
    image_size = 16
    prompt_size = 4
    batch = 2

    key = jax.random.PRNGKey(0)
    k_pad, k_x = jax.random.split(key)

    pad_down = jax.random.normal(
        k_pad, (1, 3, prompt_size, image_size), dtype=jnp.float32
    )
    x = jax.random.normal(
        k_x, (batch, 3, image_size, image_size), dtype=jnp.float32
    )

    out = jax.block_until_ready(stripe_pad_prompter(x, pad_down))

    # pure-JAX reference check (mirrors the torch concat + add)
    base = jnp.zeros((1, 3, image_size - prompt_size, image_size), jnp.float32)
    prompt = jnp.concatenate([pad_down, base], axis=2)
    ref = x + prompt
    assert out.shape == x.shape and out.dtype == x.dtype
    assert jnp.allclose(out, ref, atol=1e-6), "mismatch vs reference"

    print("KERNEL_OK")
</pallas_src>

<mosaic_0001>
module attributes {stable_mosaic.version = 11 : i64} {
  func.func @_add_prompt_kernel(%arg0: i32, %arg1: i32, %arg2: memref<2x384xf32, #tpu.memory_space<vmem>>, %arg3: memref<2x384xf32, #tpu.memory_space<vmem>>, %arg4: memref<2x384xf32, #tpu.memory_space<vmem>>) attributes {dimension_semantics = [#tpu.dimension_semantics<parallel>, #tpu.dimension_semantics<parallel>], iteration_bounds = array<i64: 2, 1>, scalar_prefetch = 0 : i64, scratch_operands = 0 : i64, tpu.core_type = #tpu.core_type<tc>, window_params = [{transform_indices = @transform_0, window_bounds = array<i64: 2, 384>}, {transform_indices = @transform_1, window_bounds = array<i64: 2, 384>}, {transform_indices = @transform_2, window_bounds = array<i64: 2, 384>}]} {
    %c0 = arith.constant 0 : index
    %c0_0 = arith.constant 0 : index
    %0 = vector.load %arg3[%c0, %c0_0] : memref<2x384xf32, #tpu.memory_space<vmem>>, vector<2x384xf32>
    %c0_1 = arith.constant 0 : index
    %c0_2 = arith.constant 0 : index
    %1 = vector.load %arg2[%c0_1, %c0_2] : memref<2x384xf32, #tpu.memory_space<vmem>>, vector<2x384xf32>
    %2 = arith.addf %0, %1 : vector<2x384xf32>
    %c0_3 = arith.constant 0 : index
    %c0_4 = arith.constant 0 : index
    %3 = vector.load %arg4[%c0_3, %c0_4] : memref<2x384xf32, #tpu.memory_space<vmem>>, vector<2x384xf32>
    tpu.vector_store %arg4[%c0_3, %c0_4], %2 {strides = array<i32>} : memref<2x384xf32, #tpu.memory_space<vmem>>, vector<2x384xf32>,
    return
  }
  func.func @transform_0(%arg0: i32, %arg1: i32) -> (i32, i32) {
    %c0_i32 = arith.constant 0 : i32
    %c0_i32_0 = arith.constant 0 : i32
    return %c0_i32, %arg0 : i32, i32
  }
  func.func @transform_1(%arg0: i32, %arg1: i32) -> (i32, i32) {
    %c0_i32 = arith.constant 0 : i32
    return %arg1, %arg0 : i32, i32
  }
  func.func @transform_2(%arg0: i32, %arg1: i32) -> (i32, i32) {
    %c0_i32 = arith.constant 0 : i32
    return %arg1, %arg0 : i32, i32
  }
}

</mosaic_0001>

<bundles_post_ra>
// kernel: tpu_custom_call.1
= control target key start
LH: loop header
LB: loop body
LE: loop exit
PB: predicated region body
PF: predicated region fallthrough
CT: control target
= control target key end

     0   :  { %7 = vsyncpa [#allocation3], 0  ;;  %s814_s0 = inlined_call_operand.hbm [shape: f32[2,768], index: 0, kind: input, shape index: {}]   ;;  %s815_s1 = inlined_call_operand.hbm [shape: f32[2,768], index: 1, kind: input, shape index: {}]   ;;  %s816_s2 = inlined_call_operand.hbm [shape: f32[2,768], index: 2, kind: output, shape index: {}]  }
   0x1   :  { %9 = vsyncpa [#allocation3 + $0x1], 0 }
   0x2   :  { %10 = vsyncpa [#allocation6], 0 }
   0x3   :  { %12 = vsyncpa [#allocation6 + $0x1], 0 }
   0x4   :  { %13 = vsyncpa [#allocation4], 0 }
   0x5   :  { %15 = vsyncpa [#allocation4 + $0x1], 0  ;;  %s596_s9 = smov 0   ;;  %s598_s10 = smov 0  }
   0x6   :  { %s600_s11 = smov 0   ;;  %s602_s12 = smov 0  }
   0x7   :  { %s604_s13 = smov 0   ;;  %s606_s14 = smov 0  }
   0x8 LB: > { %s347_s15 = sadd.s32 4294967295, %s576_s14   ;;  %s348_s16 = sadd.s32 4294967294, %s576_s14   ;;  %s576_s14 = sphi %s606_s14, %s21_s14   ;;  %s572_s13 = sphi %s604_s13, %s835_s13   ;;  %s568_s12 = sphi %s602_s12, %s834_s12   ;;  %s564_s11 = sphi %s600_s11, %s833_s11   ;;  %s560_s10 = sphi %s598_s10, %s832_s10   ;;  %s556_s9 = sphi %s596_s9, %s831_s9  }
   0x9   : > { %s33_s17 = sadd.s32 1, %s572_s13  ;;  %s40_s18 = sadd.s32 1, %s564_s11 }
   0xa   : > { %p35_p0 = scmp.ge.s32.totalorder %s33_s17, 2  ;;  %p47_p1 = scmp.ne.s32.totalorder %s564_s11, %s560_s10 }
   0xb   : > { %p48_p2 = scmp.eq.s32.totalorder %s576_s14, 0  ;;  %p53_p3 = scmp.ne.s32.totalorder %s560_s10, %s556_s9 }
   0xc   : > { %s837_s17 = smov (%p35_p0, %s33_s17), 0  ;;  %p54_p5 = scmp.eq.s32.totalorder %s347_s15, 0 }
   0xd   : > { %p637_p4 = por %p48_p2, %p47_p1  ;;  %s37_s20 = ssub.s32 %s572_s13, %s837_s17 }
   0xe   : > { %p107_p6 = scmp.eq.s32.totalorder %s347_s15, 1  ;;  %p38_p7 = scmp.eq.s32.totalorder %s37_s20, 0 }
   0xf   : > { %p643_p8 = por %p54_p5, %p53_p3  ;;  %p113_p10 = scmp.eq.s32.totalorder %s348_s16, 1 }
  0x10   : > { %p647_p9 = por %p107_p6, %p47_p1  ;;  %p380_p13 = scmp.lt.s32.totalorder %s576_s14, 2 }
  0x11   : > { %s820_s21 = scalar_select %p643_p8, 1, 0 }
  0x12   : > { %s821_s22 = scalar_select %p647_p9, 1, 0 }
  0x13   : > { %s652_s23 = scalar_select %p38_p7, %s564_s11, %s40_s18  }
  0x14   : > { %p654_p11 = por %p113_p10, %p53_p3  ;;  %s661_s25 = sand.u32 1, %s564_s11  }
  0x15   : > { %s360_s26 = smul.u32 6, %s661_s25  ;;  %p667_p0 = pnand %p380_p13, %p637_p4 }
  0x16   : > { %s822_s24 = scalar_select %p654_p11, 1, 0 }
  0x17   : > { %s357_s27 = smul.u32 96, %s572_s13  ;;  %s137_s4 = scalar_lea.vmem [#allocation2], %s360_s26 }
  0x18   : > { %s145_s5 = sshll.u32 %s137_s4, 4  ;;  %s134_s6 = scalar_lea.sflag [#allocation3], %s661_s25  ;;  %s681_s5 = int_to_ptr.vmem [resolvable:$true] %s145_s5 }
  0x19   : > { %s677_s3 = scalar_lea.hbm %s814_s0, %s357_s27  ;;  %p432_p3 = pneg %p667_p0 }
  0x1a   : > { %s430_s7 = scalar_lea.hbm %s677_s3, 96  ;;  %s435_s16 = scalar_lea.hbm %s814_s0, 192 }
  0x1b   : > { %p431_p2 = scmp.ne.s32.totalorder %s677_s3, %s430_s7  ;;  %p436_p6 = scmp.lt.u32.totalorder %s677_s3, %s814_s0 }
  0x1c   : > { %p437_p7 = scmp.lt.u32.totalorder %s435_s16, %s430_s7  ;;  %p439_p13 = scmp.lt.u32.totalorder %s430_s7, %s677_s3 }
  0x1d   : > { %p433_p4 = pnand %p432_p3, %p431_p2 }
  0x1e   : > { %p438_p10 = por %p437_p7, %p436_p6 }
  0x1f   : > { %p434_p5 = pneg %p433_p4 }
  0x20   : > { %p440_p12 = por %p439_p13, %p438_p10 }
  0x22   : > { %p441_p1 = pnand %p440_p12, %p434_p5 }
  0x24   : > { %444 = shalt.err (!%p441_p1)
}
  0x25   : > { %s445_s20 = scalar_lea.vmem %s681_s5, 96  ;;  %s578_s29 = smov [#allocation2]  }
  0x26   : > { %p446_p2 = scmp.ne.s32.totalorder %s681_s5, %s445_s20  ;;  %s450_s30 = sshll.u32 %s578_s29, 4  ;;  %s451_s30 = int_to_ptr.vmem [resolvable:$false] %s450_s30 }
  0x27   : > { %s452_s4 = scalar_lea.vmem %s451_s30, 192  ;;  %p453_p9 = scmp.lt.s32.totalorder %s681_s5, %s451_s30 }
  0x28   : > { %p448_p4 = pnand %p446_p2, %p432_p3  ;;  %p454_p6 = scmp.lt.s32.totalorder %s452_s4, %s445_s20 }
  0x2a   : > { %p449_p11 = pneg %p448_p4  ;;  %p455_p7 = por %p454_p6, %p453_p9 }
  0x2c   : > { %p456_p10 = pnand %p455_p7, %p449_p11 }
  0x2e   : > { %459 = shalt.err (!%p456_p10)
}
  0x2f   : > { %372 = dma.hbm_to_vmem [thread:$0]  (!%p667_p0), %s677_s3, 96, %s681_s5, %s134_s6  }
  0x30   : > { %p171_p12 = scmp.lt.s32.totalorder %s576_s14, 3  ;;  %s715_s15 = scalar_lea.hbm %s815_s1, %s357_s27 }
  0x31   : > { %p824_p9 = scmp.ge.s32.totalorder %s576_s14, 1  ;;  %s156_s18 = scalar_lea.vmem [#allocation5], %s360_s26 }
  0x32   : > { %s166_s19 = sshll.u32 %s156_s18, 4  ;;  %s153_s3 = scalar_lea.sflag [#allocation6], %s661_s25  ;;  %s167_s19 = int_to_ptr.vmem [resolvable:$true] %s166_s19 }
  0x33   : > { %p719_p11 = pnand %p824_p9, %p171_p12  ;;  %s460_s5 = scalar_lea.hbm %s715_s15, 96 }
  0x34   : > { %p461_p1 = scmp.ne.s32.totalorder %s715_s15, %s460_s5  ;;  %s465_s20 = scalar_lea.hbm %s815_s1, 192 }
  0x35   : > { %s825_s16 = scalar_select %p719_p11, 1, 0 }
  0x36   : > { %p463_p5 = pnand %p461_p1, %p432_p3  ;;  %p466_p2 = scmp.lt.u32.totalorder %s715_s15, %s815_s1 }
  0x37   : > { %p467_p4 = scmp.lt.u32.totalorder %s465_s20, %s460_s5  ;;  %p469_p7 = scmp.lt.u32.totalorder %s460_s5, %s715_s15 }
  0x38   : > { %p464_p13 = pneg %p463_p5 }
  0x39   : > { %p468_p6 = por %p467_p4, %p466_p2 }
  0x3b   : > { %p470_p10 = por %p469_p7, %p468_p6 }
  0x3d   : > { %p471_p12 = pnand %p470_p10, %p464_p13 }
  0x3f   : > { %474 = shalt.err (!%p471_p12)
}
  0x40   : > { %s475_s25 = scalar_lea.vmem %s167_s19, 96  ;;  %s579_s26 = smov [#allocation5]  }
  0x41   : > { %p476_p9 = scmp.ne.s32.totalorder %s167_s19, %s475_s25  ;;  %s480_s4 = sshll.u32 %s579_s26, 4  ;;  %s481_s4 = int_to_ptr.vmem [resolvable:$false] %s480_s4 }
  0x42   : > { %s482_s7 = scalar_lea.vmem %s481_s4, 192  ;;  %p483_p8 = scmp.lt.s32.totalorder %s167_s19, %s481_s4 }
  0x43   : > { %p478_p1 = pnand %p476_p9, %p432_p3  ;;  %p484_p11 = scmp.lt.s32.totalorder %s482_s7, %s475_s25 }
  0x45   : > { %p479_p5 = pneg %p478_p1  ;;  %p485_p2 = por %p484_p11, %p483_p8 }
  0x47   : > { %p486_p4 = pnand %p485_p2, %p479_p5 }
  0x49   : > { %489 = shalt.err (!%p486_p4)
}
  0x4a   : > { %375 = dma.hbm_to_vmem [thread:$0]  (!%p667_p0), %s715_s15, 96, %s167_s19, %s153_s3  }
  0x4b   : > { %p826_p13 = scmp.ne.s32.totalorder %s825_s16, 0 }
  0x4c   : > { %s748_s8 = sand.u32 (!%p826_p13), 1, %s560_s10   ;;  %p827_p3 = scmp.ne.s32.totalorder (!%p826_p13), %s820_s21, 0 }
  0x4d   : > { %175 = sbr.rel (%p826_p13) target bundleno = 113 (0x71), region = 28  ;;  %s178_s5 = scalar_lea.sflag (!%p826_p13), [#allocation3], %s748_s8 }
  0x4e   : > { %s362_s18 = smul.u32 (!%p826_p13), 6, %s748_s8 }
  0x50   : > { %s181_s27 = scalar_lea.vmem (!%p826_p13), [#allocation2], %s362_s18 }
  0x54   : > { %543 = dma.done.wait (%p827_p3), %s178_s5, 96  }
  0x55   : > { %545 = vsyncadd (%p827_p3), %s178_s5, 4294967200  ;;  %s187_s28 = scalar_lea.sflag [#allocation6], %s748_s8  ;;  %s190_s15 = scalar_lea.vmem [#allocation5], %s362_s18 }
  0x56   : > { %547 = dma.done.wait (%p827_p3), %s187_s28, 96  }
  0x57   : > { %549 = vsyncadd (%p827_p3), %s187_s28, 4294967200  ;;  %s359_s16 = smul.u32 96, %s568_s12  ;;  %s215_s19 = scalar_lea.vmem [#allocation7], %s362_s18  ;;  %v219_v0 = vld [vmem:[%s190_s15] sm:$0x3f] }
  0x58   : > { %s240_s3 = sshll.u32 %s215_s19, 4  ;;  %v220_v1 = vld [vmem:[%s181_s27] sm:$0x3f]  ;;  %s224_s21 = scalar_lea.sflag [#allocation4], %s748_s8  ;;  %s762_s3 = int_to_ptr.vmem [resolvable:$true] %s240_s3 }
  0x59   : > { %v221_v2 = vadd.f32 %v220_v1, %v219_v0  ;;  %s767_s29 = scalar_lea.hbm %s816_s2, %s359_s16  ;;  %s490_s30 = scalar_lea.vmem %s762_s3, 96 }
  0x5a   : > { %p491_p8 = scmp.ne.s32.totalorder %s762_s3, %s490_s30  ;;  %p828_p0 = scmp.ne.s32.totalorder %s821_s22, 0 }
  0x5b   : > { %222 = vst [vmem:[%s215_s19] sm:$0x3f] %v221_v2  ;;  %s580_s12 = smov [#allocation7]  }
  0x5c   : > { %p492_p11 = pnand %p491_p8, %p828_p0  ;;  %s494_s25 = sshll.u32 %s580_s12, 4  ;;  %s495_s25 = int_to_ptr.vmem [resolvable:$false] %s494_s25 }
  0x5d   : > { %s496_s26 = scalar_lea.vmem %s495_s25, 192  ;;  %p497_p7 = scmp.lt.s32.totalorder %s762_s3, %s495_s25 }
  0x5e   : > { %p493_p6 = pneg %p492_p11  ;;  %p498_p10 = scmp.lt.s32.totalorder %s496_s26, %s490_s30 }
  0x60   : > { %p499_p12 = por %p498_p10, %p497_p7 }
  0x62   : > { %p500_p9 = pnand %p499_p12, %p493_p6 }
  0x64   : > { %503 = shalt.err (!%p500_p9)
}
  0x65   : > { %s504_s4 = scalar_lea.hbm %s767_s29, 96  ;;  %s508_s18 = scalar_lea.hbm %s816_s2, 192 }
  0x66   : > { %p505_p1 = scmp.ne.s32.totalorder %s767_s29, %s504_s4  ;;  %p509_p4 = scmp.lt.u32.totalorder %s767_s29, %s816_s2 }
  0x67   : > { %p510_p13 = scmp.lt.u32.totalorder %s508_s18, %s504_s4  ;;  %p512_p8 = scmp.lt.u32.totalorder %s504_s4, %s767_s29 }
  0x68   : > { %p506_p5 = pnand %p505_p1, %p828_p0 }
  0x69   : > { %p511_p3 = por %p510_p13, %p509_p4 }
  0x6a   : > { %p507_p2 = pneg %p506_p5 }
  0x6b   : > { %p513_p11 = por %p512_p8, %p511_p3 }
  0x6d   : > { %p514_p6 = pnand %p513_p11, %p507_p2 }
  0x6f   : > { %517 = shalt.err (!%p514_p6)
}
  0x70   : > { %367 = dma.vmem_to_hbm [thread:$0]  (%p828_p0), %s762_s3, 96, %s767_s29, %s224_s21  }
  0x71 PF: > { %s252_s28 = sand.u32 1, %s556_s9   ;;  %p829_p7 = scmp.ne.s32.totalorder %s822_s24, 0 }
  0x72   : > { %p830_p10 = scmp.ge.s32.totalorder %s576_s14, 2  ;;  %s253_s15 = scalar_lea.sflag [#allocation4], %s252_s28 }
  0x74   : > { %p377_p12 = pnand %p830_p10, %p829_p7 }
  0x76   : > { %551 = dma.done.wait (!%p377_p12), %s253_s15, 96  }
  0x77   : > { %553 = vsyncadd (!%p377_p12), %s253_s15, 4294967200  ;;  %s21_s14 = sadd.s32 1, %s576_s14   ;;  %s831_s9 = smov %s560_s10 }
  0x78   : > { %p18_p9 = scmp.ge.s32.totalorder %s21_s14, 4   ;;  %s832_s10 = smov %s564_s11 }
  0x79   : > { %s833_s11 = smov %s652_s23  ;;  %s834_s12 = smov %s572_s13 }
  0x7a   : > { %s835_s13 = smov %s837_s17  ;;  %20 = sbr.rel (!%p18_p9) target bundleno = 8 (0x8), region = 86 }
  0x81   :  { %258 = vsyncpa [#allocation3], 1 }
  0x82   :  { %260 = vsyncpa [#allocation3 + $0x1], 1 }
  0x83   :  { %261 = vsyncpa [#allocation6], 1 }
  0x84   :  { %263 = vsyncpa [#allocation6 + $0x1], 1 }
  0x85   :  { %264 = vsyncpa [#allocation4], 1 }
  0x86   :  { %266 = vsyncpa [#allocation4 + $0x1], 1 }

</bundles_post_ra>
